<compile_context>
chip_gen: v7x
topology: tpu7x:2x2x1
jax: 0.10.0
libtpu: 0.0.40
codegen_flags: <defaults>
</compile_context>

<pallas_src>
import jax
import jax.numpy as jnp
import numpy as np
from jax.experimental import pallas as pl
from jax.experimental.pallas import tpu as pltpu

_LANE = 128
_VMEM_LIMIT = 32 * 1024 * 1024  # explicit scoped-VMEM cap, safe on v5e/v6e/v7x


def _round_up(n, m):
    return (n + m - 1) // m * m


def _pad2d(a, rows, cols, dtype):
    r, c = a.shape
    return jnp.pad(a.astype(dtype), ((0, rows - r), (0, cols - c)))


def _node_tiles(n):
    """Padded node count and (dst_tile, src_tile) sizes."""
    if n <= 256:
        n_p = _round_up(n, 16)            # whole graph fits one block each way
        return n_p, n_p, n_p
    n_p = _round_up(n, 512)
    return n_p, 256, 512                   # bf16 adj tile = 256 KiB -> fits v7x VMEM


# ---------------------------------------------------------------------------
# Kernel (a): per-node linear layer  y = x @ w + b  (bf16 in/out, f32 accumulate)
# ---------------------------------------------------------------------------
def _fc_kernel(x_ref, w_ref, b_ref, y_ref):
    y = jnp.dot(x_ref[...], w_ref[...], preferred_element_type=jnp.float32)
    y_ref[...] = (y + b_ref[...]).astype(y_ref.dtype)


def _fc(x_bf, w_bf, b_f32, tm):
    n_p, f_p = x_bf.shape
    h_p = w_bf.shape[1]
    # TODO(synk): tile the contracted dim too if in_feats ever exceeds ~8K.
    return pl.pallas_call(
        _fc_kernel,
        out_shape=jax.ShapeDtypeStruct((n_p, h_p), jnp.bfloat16),
        grid=(n_p // tm,),
        in_specs=[pl.BlockSpec((tm, f_p), lambda i: (i, 0)),
                  pl.BlockSpec((f_p, h_p), lambda i: (0, 0)),
                  pl.BlockSpec((1, h_p), lambda i: (0, 0))],
        out_specs=pl.BlockSpec((tm, h_p), lambda i: (i, 0)),
        compiler_params=pltpu.CompilerParams(
            dimension_semantics=("parallel",),
            vmem_limit_bytes=_VMEM_LIMIT),
    )(x_bf, w_bf, b_f32)


# ---------------------------------------------------------------------------
# Kernel (b): masked mailbox-mean aggregation + reduce epilogue
#   grid = (dst tiles ["parallel"], src tiles ["arbitrary" = reduction])
# ---------------------------------------------------------------------------
def _egi_agg_kernel(adj_ref, vrow_ref, msg_ref, rootsrc_ref, fcx_ref,
                    m_old_ref, root_old_ref, new_m_ref, new_root_ref, cnt_ref):
    k = pl.program_id(1)

    @pl.when(k == 0)
    def _init():
        new_m_ref[...] = jnp.zeros_like(new_m_ref)
        new_root_ref[...] = jnp.zeros_like(new_root_ref)
        cnt_ref[...] = jnp.zeros_like(cnt_ref)

    # Fold the push-source mask into the adjacency tile in VMEM (0/1 bf16, exact).
    adj = adj_ref[...] * vrow_ref[...]                         # [TM, TK] bf16
    # Mailbox sums for this src tile: bf16 MXU, f32 accumulation into outputs.
    new_m_ref[...] += jnp.dot(adj, msg_ref[...],
                              preferred_element_type=jnp.float32)
    new_root_ref[...] += jnp.dot(adj, rootsrc_ref[...],
                                 preferred_element_type=jnp.float32)
    cnt_ref[...] += jnp.sum(adj.astype(jnp.float32), axis=1, keepdims=True)

    @pl.when(k == pl.num_programs(1) - 1)
    def _finalize():
        cnt = cnt_ref[...]                                     # exact integer counts
        has_msg = cnt > 0.0
        inv = pl.reciprocal(jnp.maximum(cnt, 1.0), approx=False)   # one recip, reused
        mean_m = new_m_ref[...] * inv
        mean_root = new_root_ref[...] * inv
        fc_dst = fcx_ref[...].astype(jnp.float32)
        new_m_ref[...] = jnp.where(has_msg,
                                   jnp.maximum(fc_dst + mean_m, 0.0),
                                   m_old_ref[...])
        new_root_ref[...] = jnp.where(has_msg, mean_root, root_old_ref[...])


# ---------------------------------------------------------------------------
# Functional port of GNNDiscLayer.forward
# ---------------------------------------------------------------------------
def gnn_disc_layer_forward(x, m, root, w, b, adj_dst_src, v_mask,
                           edge_src, edge_dst, depth=1):
    """Returns (output, new_m, new_root):
      output          == g.edata['output'][edges] (built from PRE-push node data)
      new_m, new_root == node-data mutation performed by g.push(v, msg, reduce)
    """
    N, F = x.shape
    H = w.shape[1]
    R = root.shape[1]
    if depth != 1:
        assert m.shape[1] == F, "depth>1 path (fc(m)) requires in_feats == n_hidden"

    n_p, tm, tk = _node_tiles(N)
    f_p = _round_up(F, _LANE)
    h_p = _round_up(H, _LANE)
    r_p = _round_up(R, _LANE)
    bf, f32 = jnp.bfloat16, jnp.float32

    # --- padded / typed operands (adjacency kept as ONE bf16 copy) -----------
    x_bf = _pad2d(x, n_p, f_p, bf)
    w_bf = _pad2d(w, f_p, h_p, bf)
    b_f32 = _pad2d(b.reshape(1, H), 1, h_p, f32)
    root_bf = _pad2d(root, n_p, r_p, bf)
    adj_bf = _pad2d(adj_dst_src, n_p, n_p, bf)                # 0/1 exact in bf16
    vrow_bf = _pad2d(v_mask.reshape(1, N), 1, n_p, bf)        # push-source mask
    m_old = _pad2d(m, n_p, h_p, f32)
    root_old = _pad2d(root, n_p, r_p, f32)

    # --- stage 1: per-node fc (depth==1 reuses fc(x) for msg AND reduce term) -
    fcx = _fc(x_bf, w_bf, b_f32, tm)                          # fc(x) [n_p, h_p] bf16
    if depth == 1:
        msg_feat = fcx                                         # layer_1: no 2nd matmul
    else:
        msg_feat = _fc(_pad2d(m, n_p, f_p, bf), w_bf, b_f32, tm)   # fc(m)

    # --- stage 2: aggregation + reduce -------------------------------------
    flops = 2 * n_p * n_p * (h_p + r_p)
    bytes_accessed = (adj_bf.size * 2 + msg_feat.size * 2 + root_bf.size * 2 +
                      fcx.size * 2 + m_old.size * 4 + root_old.size * 4 +
                      n_p * (h_p + r_p) * 4)
    new_m_p, new_root_p = pl.pallas_call(
        _egi_agg_kernel,
        out_shape=(jax.ShapeDtypeStruct((n_p, h_p), f32),
                   jax.ShapeDtypeStruct((n_p, r_p), f32)),
        grid_spec=pltpu.PrefetchScalarGridSpec(
            num_scalar_prefetch=0,
            grid=(n_p // tm, n_p // tk),
            in_specs=[pl.BlockSpec((tm, tk), lambda i, k: (i, k)),    # adj[dst,src]
                      pl.BlockSpec((1, tk), lambda i, k: (0, k)),     # v_mask row
                      pl.BlockSpec((tk, h_p), lambda i, k: (k, 0)),   # msg feats (src)
                      pl.BlockSpec((tk, r_p), lambda i, k: (k, 0)),   # root (src)
                      pl.BlockSpec((tm, h_p), lambda i, k: (i, 0)),   # fc(x) (dst)
                      pl.BlockSpec((tm, h_p), lambda i, k: (i, 0)),   # m (old)
                      pl.BlockSpec((tm, r_p), lambda i, k: (i, 0))],  # root (old)
            out_specs=(pl.BlockSpec((tm, h_p), lambda i, k: (i, 0)),
                       pl.BlockSpec((tm, r_p), lambda i, k: (i, 0))),
            scratch_shapes=[pltpu.VMEM((tm, 1), f32)]),
        compiler_params=pltpu.CompilerParams(
            dimension_semantics=("parallel", "arbitrary"),
            vmem_limit_bytes=_VMEM_LIMIT),
        cost_estimate=pl.CostEstimate(flops=flops, transcendentals=n_p,
                                      bytes_accessed=bytes_accessed),
    )(adj_bf, vrow_bf, msg_feat, root_bf, fcx, m_old, root_old)

    new_m = new_m_p[:N, :H]
    new_root = new_root_p[:N, :R]

    # apply_edges: 'output' = cat([src.root, src.m, dst.x], 1) on the given edge
    # ids, using PRE-push node data — pure gather/concat glue, left to XLA.
    output = jnp.concatenate(
        [jnp.take(root, edge_src, axis=0),
         jnp.take(m, edge_src, axis=0),
         jnp.take(x, edge_dst, axis=0)], axis=1)
    # TODO(synk): when stacking layers, alias new_m/new_root onto the old buffers
    # via input_output_aliases to drop one HBM round-trip per layer.
    return output, new_m, new_root


# ---------------------------------------------------------------------------
# Plain-JAX reference mirroring the kernel's bf16-operand / f32-accum precision
# ---------------------------------------------------------------------------
def _ref_forward(x, m, root, w, b, adj, v_mask, edge_src, edge_dst, depth):
    bf, f32 = jnp.bfloat16, jnp.float32
    fc = lambda z: (jnp.dot(z.astype(bf), w.astype(bf),
                            preferred_element_type=f32) + b).astype(bf)
    fcx = fc(x)
    msg = fcx if depth == 1 else fc(m)
    adj_v = adj.astype(bf) * v_mask.astype(bf)[None, :]
    agg_m = jnp.dot(adj_v, msg, preferred_element_type=f32)
    agg_root = jnp.dot(adj_v, root.astype(bf), preferred_element_type=f32)
    cnt = jnp.sum(adj_v.astype(f32), axis=1, keepdims=True)
    has = cnt > 0
    den = jnp.maximum(cnt, 1.0)
    ref_m = jnp.where(has, jnp.maximum(fcx.astype(f32) + agg_m / den, 0.0), m)
    ref_root = jnp.where(has, agg_root / den, root)
    ref_out = jnp.concatenate([root[edge_src], m[edge_src], x[edge_dst]], axis=1)
    return ref_out, ref_m, ref_root


if __name__ == "__main__":
    key = jax.random.PRNGKey(0)
    N, in_feats, n_hidden = 16, 32, 32
    k = jax.random.split(key, 8)

    x = jax.random.normal(k[0], (N, in_feats), jnp.float32)     # nodes.data['x']
    m = jax.random.normal(k[1], (N, n_hidden), jnp.float32)     # nodes.data['m']
    root = jax.random.normal(k[2], (N, n_hidden), jnp.float32)  # nodes.data['root']

    # deterministic nn.Linear(in_feats, n_hidden) params ([F,H] = torch W^T)
    bound = 1.0 / (in_feats ** 0.5)
    w = jax.random.uniform(k[3], (in_feats, n_hidden), jnp.float32, -bound, bound)
    b = jax.random.uniform(k[4], (n_hidden,), jnp.float32, -bound, bound)

    # small random simple directed graph, adjacency indexed [dst, src]
    adj = (jax.random.uniform(k[5], (N, N)) < 0.25).astype(jnp.float32)
    adj = adj * (1.0 - jnp.eye(N, dtype=jnp.float32))

    # v: nodes whose out-edges carry messages (g.push(v, ...))
    v_mask = (jnp.arange(N) < N // 2).astype(jnp.float32)

    # edge-id subset for apply_edges
    dst_ids, src_ids = jnp.nonzero(adj, size=N * N, fill_value=0)
    n_e = 8
    edge_src, edge_dst = src_ids[:n_e], dst_ids[:n_e]

    # depth == 1 (layer_1) path
    out, new_m, new_root = gnn_disc_layer_forward(
        x, m, root, w, b, adj, v_mask, edge_src, edge_dst, depth=1)
    jax.block_until_ready((out, new_m, new_root))

    ref_out, ref_m, ref_root = _ref_forward(
        x, m, root, w, b, adj, v_mask, edge_src, edge_dst, depth=1)
    assert np.allclose(np.asarray(out), np.asarray(ref_out), atol=1e-5)
    assert np.allclose(np.asarray(new_m), np.asarray(ref_m), atol=2e-3)
    assert np.allclose(np.asarray(new_root), np.asarray(ref_root), atol=2e-3)

    # depth > 1 (layer_1 == False) path
    out2, m2, r2 = gnn_disc_layer_forward(
        x, new_m, new_root, w, b, adj, v_mask, edge_src, edge_dst, depth=2)
    jax.block_until_ready((out2, m2, r2))
    ref_out2, ref_m2, ref_r2 = _ref_forward(
        x, new_m, new_root, w, b, adj, v_mask, edge_src, edge_dst, depth=2)
    assert np.allclose(np.asarray(out2), np.asarray(ref_out2), atol=1e-5)
    assert np.allclose(np.asarray(m2), np.asarray(ref_m2), atol=2e-3)
    assert np.allclose(np.asarray(r2), np.asarray(ref_r2), atol=2e-3)

    print("KERNEL_OK")
</pallas_src>

<mosaic_0001>
module attributes {stable_mosaic.version = 11 : i64} {
  func.func @_fc_kernel(%arg0: i32, %arg1: memref<16x128xbf16, #tpu.memory_space<vmem>>, %arg2: memref<128x128xbf16, #tpu.memory_space<vmem>>, %arg3: memref<1x128xf32, #tpu.memory_space<vmem>>, %arg4: memref<16x128xbf16, #tpu.memory_space<vmem>>) attributes {dimension_semantics = [#tpu.dimension_semantics<parallel>], iteration_bounds = array<i64: 1>, scalar_prefetch = 0 : i64, scratch_operands = 0 : i64, tpu.core_type = #tpu.core_type<tc>, window_params = [{transform_indices = @transform_0, window_bounds = array<i64: 16, 128>}, {pipeline_mode = #tpu.pipeline_mode<synchronous>, transform_indices = @transform_1, window_bounds = array<i64: 128, 128>}, {pipeline_mode = #tpu.pipeline_mode<synchronous>, transform_indices = @transform_2, window_bounds = array<i64: 1, 128>}, {transform_indices = @transform_3, window_bounds = array<i64: 16, 128>}]} {
    %c0 = arith.constant 0 : index
    %c0_0 = arith.constant 0 : index
    %0 = vector.load %arg1[%c0, %c0_0] : memref<16x128xbf16, #tpu.memory_space<vmem>>, vector<16x128xbf16>
    %c0_1 = arith.constant 0 : index
    %c0_2 = arith.constant 0 : index
    %1 = vector.load %arg2[%c0_1, %c0_2] : memref<128x128xbf16, #tpu.memory_space<vmem>>, vector<128x128xbf16>
    %cst = arith.constant dense<0.000000e+00> : vector<16x128xf32>
    %2 = tpu.matmul %0, %1, %cst {dimension_numbers = #tpu.dot_dimension_numbers<[1], [0], [0], [1], [0, 0, 1, 1], [], []>} : vector<16x128xbf16>, vector<128x128xbf16>, vector<16x128xf32> -> vector<16x128xf32>
    %c0_3 = arith.constant 0 : index
    %c0_4 = arith.constant 0 : index
    %3 = vector.load %arg3[%c0_3, %c0_4] : memref<1x128xf32, #tpu.memory_space<vmem>>, vector<1x128xf32>
    %4 = vector.broadcast %3 : vector<1x128xf32> to vector<16x128xf32>
    %5 = arith.addf %2, %4 : vector<16x128xf32>
    %6 = arith.truncf %5 : vector<16x128xf32> to vector<16x128xbf16>
    %c0_5 = arith.constant 0 : index
    %c0_6 = arith.constant 0 : index
    %7 = vector.load %arg4[%c0_5, %c0_6] : memref<16x128xbf16, #tpu.memory_space<vmem>>, vector<16x128xbf16>
    tpu.vector_store %arg4[%c0_5, %c0_6], %6 {strides = array<i32>} : memref<16x128xbf16, #tpu.memory_space<vmem>>, vector<16x128xbf16>,
    return
  }
  func.func @transform_0(%arg0: i32) -> (i32, i32) {
    %c0_i32 = arith.constant 0 : i32
    %c0_i32_0 = arith.constant 0 : i32
    return %arg0, %c0_i32 : i32, i32
  }
  func.func @transform_1(%arg0: i32) -> (i32, i32) {
    %c0_i32 = arith.constant 0 : i32
    %c0_i32_0 = arith.constant 0 : i32
    %c0_i32_1 = arith.constant 0 : i32
    return %c0_i32, %c0_i32_0 : i32, i32
  }
  func.func @transform_2(%arg0: i32) -> (i32, i32) {
    %c0_i32 = arith.constant 0 : i32
    %c0_i32_0 = arith.constant 0 : i32
    %c0_i32_1 = arith.constant 0 : i32
    return %c0_i32, %c0_i32_0 : i32, i32
  }
  func.func @transform_3(%arg0: i32) -> (i32, i32) {
    %c0_i32 = arith.constant 0 : i32
    %c0_i32_0 = arith.constant 0 : i32
    return %arg0, %c0_i32 : i32, i32
  }
}

</mosaic_0001>

<bundles_post_ra>
// kernel: tpu_custom_call.1
= control target key start
LH: loop header
LB: loop body
LE: loop exit
PB: predicated region body
PF: predicated region fallthrough
CT: control target
= control target key end

     0   :  { %8 = vsyncpa [#allocation3], 0  ;;  %s403_s0 = inlined_call_operand.hbm [shape: bf16[16,128], index: 0, kind: input, shape index: {}]   ;;  %s404_s1 = inlined_call_operand.hbm [shape: bf16[128,128], index: 1, kind: input, shape index: {}]   ;;  %s405_s2 = inlined_call_operand.vmem [shape: f32[1,128], index: 2, kind: input, shape index: {}]   ;;  %s406_s3 = inlined_call_operand.hbm [shape: bf16[16,128], index: 3, kind: output, shape index: {}]  }
   0x1   :  { %9 = vsyncpa [#allocation6], 0 }
   0x2   :  { %10 = vsyncpa [#allocation4], 0  ;;  %s328_s12 = smov [#allocation2]   ;;  %s256_s16 = scalar_lea.hbm %s403_s0, 128 }
   0x3   :  { %s16_s13 = sshll.u32 %s328_s12, 4  ;;  %p257_p0 = scmp.ne.s32.totalorder %s403_s0, %s256_s16  ;;  %s17_s13 = int_to_ptr.vmem [resolvable:$true] %s16_s13 }
   0x4   :  { %p260_p1 = scmp.lt.u32.totalorder %s256_s16, %s403_s0 }
   0x6   :  { %p262_p2 = pnand %p260_p1, %p257_p0 }
   0x8   :  { %265 = shalt.err (!%p262_p2)
}
   0x9   :  { %s266_s21 = scalar_lea.vmem %s17_s13, 128  ;;  %p271_p4 = scmp.lt.s32.totalorder %s17_s13, %s17_s13 }
   0xa   :  { %p267_p3 = scmp.ne.s32.totalorder %s17_s13, %s266_s21  ;;  %p272_p5 = scmp.lt.s32.totalorder %s266_s21, %s266_s21 }
   0xc   :  { %p273_p6 = por %p272_p5, %p271_p4 }
   0xe   :  { %p274_p7 = pnand %p273_p6, %p267_p3 }
  0x10   :  { %277 = shalt.err (!%p274_p7)
}
  0x11   :  { %s329_s22 = smov 64   ;;  %s330_s23 = smov 4  }
  0x12   :  { %22 = dma.hbm_to_vmem [thread:$0]  %s403_s0, 128, %s17_s13, [#allocation3], %s329_s22, %s329_s22, %s330_s23  }
  0x13   :  { %s331_s26 = smov [#allocation5]   ;;  %s278_s30 = scalar_lea.hbm %s404_s1, 1024 }
  0x14   :  { %s28_s27 = sshll.u32 %s331_s26, 4  ;;  %p279_p8 = scmp.ne.s32.totalorder %s404_s1, %s278_s30  ;;  %s29_s27 = int_to_ptr.vmem [resolvable:$true] %s28_s27 }
  0x15   :  { %p282_p9 = scmp.lt.u32.totalorder %s278_s30, %s404_s1 }
  0x17   :  { %p284_p10 = pnand %p282_p9, %p279_p8 }
  0x19   :  { %287 = shalt.err (!%p284_p10)
}
  0x1a   :  { %s288_s8 = scalar_lea.vmem %s29_s27, 1024  ;;  %p293_p12 = scmp.lt.s32.totalorder %s29_s27, %s29_s27 }
  0x1b   :  { %p289_p11 = scmp.ne.s32.totalorder %s29_s27, %s288_s8  ;;  %p294_p13 = scmp.lt.s32.totalorder %s288_s8, %s288_s8 }
  0x1d   :  { %p295_p0 = por %p294_p13, %p293_p12 }
  0x1f   :  { %p296_p1 = pnand %p295_p0, %p289_p11 }
  0x21   :  { %299 = shalt.err (!%p296_p1)
}
  0x22   :  { %34 = dma.hbm_to_vmem [thread:$0]  %s404_s1, 1024, %s29_s27, [#allocation6], %s329_s22, %s329_s22, %s330_s23  }
  0x23   :  { %322 = dma.done.wait [#allocation3], 128  }
  0x24   :  { %323 = vsyncadd [#allocation3], 4294967168 }
  0x25   :  { %324 = dma.done.wait [#allocation6], 1024  }
  0x26   :  { %325 = vsyncadd [#allocation6], 4294966272  ;;  %v332_v0 = vmov 0.0   ;;  %vm333_vm0 = vmmov 0   ;;  %v247_v1 = vld [vmem:[#allocation5] sm:$0xff]   ;;  %v248_v2 = vld [vmem:[#allocation5 + $0x8] sm:$0xff]  }
  0x27   :  { %220 = vmatprep.subr.bf16.mxu0 %v332_v0  ;;  %236 = vmatprep.mubr.msk.bf16.mxu0 %vm333_vm0, %v332_v0  ;;  %v249_v3 = vld [vmem:[#allocation5 + $0x10] sm:$0xff]   ;;  %v250_v4 = vld [vmem:[#allocation5 + $0x18] sm:$0xff]   ;;  %v251_v5 = vld [vmem:[#allocation5 + $0x20] sm:$0xff]   ;;  %s334_s11 = smov [#allocation7]  }
  0x28   :  { %221 = vmatpush3.bf16.msra.mxu0 %v247_v1  ;;  %v252_v6 = vld [vmem:[#allocation5 + $0x28] sm:$0xff]   ;;  %v253_v7 = vld [vmem:[#allocation5 + $0x30] sm:$0xff]   ;;  %v254_v8 = vld [vmem:[#allocation5 + $0x38] sm:$0xff]   ;;  %s179_s12 = sshll.u32 %s334_s11, 4  ;;  %s180_s12 = int_to_ptr.vmem [resolvable:$true] %s179_s12 }
  0x29   :  { %222 = vmatprep.subr.bf16.mxu0 %v332_v0  ;;  %v255_v9 = vld [vmem:[#allocation2] sm:$0xff]   ;;  %s300_s13 = scalar_lea.vmem %s180_s12, 128  ;;  %p305_p3 = scmp.lt.s32.totalorder %s180_s12, %s180_s12 }
  0x2a   :  { %v192_v10 = vld [vmem:[%s405_s2] ss:$0 sm:$0xff]  ;;  %p301_p2 = scmp.ne.s32.totalorder %s180_s12, %s300_s13  ;;  %p306_p4 = scmp.lt.s32.totalorder %s300_s13, %s300_s13 }
  0x2c   :  { %223 = vmatpush3.bf16.msra.mxu0 %v248_v2  ;;  %p307_p5 = por %p306_p4, %p305_p3 }
  0x2d   :  { %224 = vmatprep.subr.bf16.mxu0 %v332_v0 }
  0x2e   :  { %p308_p6 = pnand %p307_p5, %p301_p2 }
  0x30   :  { %225 = vmatpush3.bf16.msra.mxu0 %v249_v3 }
  0x31   :  { %226 = vmatprep.subr.bf16.mxu0 %v332_v0 }
  0x34   :  { %227 = vmatpush3.bf16.msra.mxu0 %v250_v4 }
  0x35   :  { %228 = vmatprep.subr.bf16.mxu0 %v332_v0 }
  0x38   :  { %229 = vmatpush3.bf16.msra.mxu0 %v251_v5 }
  0x39   :  { %230 = vmatprep.subr.bf16.mxu0 %v332_v0 }
  0x3c   :  { %231 = vmatpush3.bf16.msra.mxu0 %v252_v6 }
  0x3d   :  { %232 = vmatprep.subr.bf16.mxu0 %v332_v0 }
  0x40   :  { %233 = vmatpush3.bf16.msra.mxu0 %v253_v7 }
  0x41   :  { %234 = vmatprep.subr.bf16.mxu0 %v332_v0 }
  0x44   :  { %235 = vmatpush3.bf16.msra.mxu0 %v254_v8 }
  0x47   :  { %237 = vmatmul.mubr.bf16.vlgmr.msra.gmra.mrb[0].mxu0 %v255_v9 }
 0x11a   :  { %v157_v11 = vpop.f32.mrb[0].mxu0 }
 0x11b   :  { %v238_v12 = vpop.f32.mrb[1].mxu0  ;;  %v158_v14 = vadd.f32 %v192_v10, %v157_v11 }
 0x11c   :  { %v160_v13 = vpop.f32.mrb[2].mxu0 }
 0x11d   :  { %v161_v15 = vadd.f32 %v192_v10, %v160_v13  ;;  %v239_v16 = vpop.f32.mrb[3].mxu0 }
 0x11f   :  { %v209_v17 = vpack.c.bf16 %v161_v15, %v158_v14 }
 0x121   :  { %210 = vst [vmem:[#allocation7] sm:$0xff] %v209_v17  }
 0x122   :  { %311 = shalt.err (!%p308_p6)
}
 0x123   :  { %s312_s15 = scalar_lea.hbm %s406_s3, 128 }
 0x124   :  { %p313_p7 = scmp.ne.s32.totalorder %s406_s3, %s312_s15  ;;  %p316_p8 = scmp.lt.u32.totalorder %s312_s15, %s406_s3 }
 0x126   :  { %p318_p9 = pnand %p316_p8, %p313_p7 }
 0x128   :  { %321 = shalt.err (!%p318_p9)
}
 0x129   :  { %185 = dma.vmem_to_hbm [thread:$0]  %s180_s12, 128, %s406_s3, [#allocation4], %s329_s22, %s329_s22, %s330_s23  }
 0x12a   :  { %326 = dma.done.wait [#allocation4], 128  }
 0x12b   :  { %327 = vsyncadd [#allocation4], 4294967168 }
 0x12c   :  { %189 = vsyncpa [#allocation3], 1 }
 0x12d   :  { %190 = vsyncpa [#allocation6], 1 }
 0x12e   :  { %191 = vsyncpa [#allocation4], 1 }

</bundles_post_ra>
